<compile_context>
chip_gen: v7x
topology: tpu7x:2x2x1
jax: 0.10.0
libtpu: 0.0.40
codegen_flags: <defaults>
</compile_context>

<pallas_src>
import functools

import jax
import jax.numpy as jnp
from jax.experimental import pallas as pl
from jax.experimental.pallas import tpu as pltpu

_LANE = 128      # vreg lane width (last dim)


def _round_up(x, m):
    return (x + m - 1) // m * m


def _cdiv(a, b):
    return -(-a // b)


def _device_kind():
    try:
        return jax.devices()[0].device_kind.lower()
    except Exception:
        return ""


def _feature_multiple():
    """MXU-friendly padding multiple for feature dims that already exceed 128.
    v5e (4x128x128 MXU) -> 128; v6e/v7x (2x256x256 MXU) -> 256."""
    kind = _device_kind()
    if any(v in kind for v in ("v2", "v3", "v4", "v5")):
        return 128
    return 256


def _num_tensorcores():
    """TensorCores per chip: v7x has 2, earlier generations have 1."""
    kind = _device_kind()
    return 2 if "v7" in kind else 1


def _pad_feature(d, mult):
    p = _round_up(d, _LANE)
    if mult > _LANE and d > _LANE:
        p = _round_up(d, mult)
    return p


# ----------------------------------------------------------------------------
# Fused kernel: all layers of one chunk in one body.
# ----------------------------------------------------------------------------
def _mlp_fused_kernel(x_ref, *refs, num_layers, relu_last, sigmoid_output):
    """refs = (w0, b0, ..., w_{L-1}, b_{L-1}, o_ref).

    The intermediate activation `h` is a traced value (vregs / VMEM managed by
    the compiler) -- it never leaves the chip between layers of the chunk.
    """
    o_ref = refs[-1]
    wb = refs[:-1]

    h = x_ref[...]
    for i in range(num_layers):                   # static unroll
        w = wb[2 * i][...]                        # (Kp_i, Np_i), compute dtype
        b = wb[2 * i + 1][...]                    # (1, Np_i), f32
        # MXU matmul, f32 accumulation; bias add in f32 (VPU).
        y = jnp.dot(h.astype(w.dtype), w,
                    preferred_element_type=jnp.float32) + b
        last = i == num_layers - 1
        if (not last) or relu_last:
            # ReLU in f32, then keep the resident activation in the compute
            # dtype (halves vreg traffic; identical numerics to casting at the
            # next matmul).
            h = jnp.maximum(y, 0.0).astype(w.dtype)
        elif sigmoid_output:
            h = jax.nn.sigmoid(y)                 # exp on EUP, f32
        else:
            h = y
    o_ref[...] = h.astype(o_ref.dtype)


# ----------------------------------------------------------------------------
# Parameter construction (matches nn.Linear default uniform init + shapes).
# ----------------------------------------------------------------------------
def init_mlp_params(key, input_dim, hidden_dim, output_dim, num_layers,
                    dtype=jnp.float32):
    """Unpadded logical parameters; layer i is Linear(n_i -> k_i) with
    [input_dim] + [hidden]*(L-1) -> [hidden]*(L-1) + [output_dim].
    Weights stored as (in, out) so the kernel computes x @ W + b."""
    h = [hidden_dim] * (num_layers - 1)
    in_dims = [input_dim] + h
    out_dims = h + [output_dim]
    params = []
    for n, k in zip(in_dims, out_dims):
        key, wk, bk = jax.random.split(key, 3)
        bound = 1.0 / (n ** 0.5)
        w = jax.random.uniform(wk, (n, k), dtype, minval=-bound, maxval=bound)
        b = jax.random.uniform(bk, (k,), dtype, minval=-bound, maxval=bound)
        params.append((w, b))
    return params


def prepare_params(params, compute_dtype=jnp.bfloat16, feature_multiple=None):
    """One-time padding/casting:
      * weights -> compute_dtype, zero-padded so both dims are lane-dense
        (multiples of 128; multiples of 256 for >128 dims on v6e/v7x)
      * biases  -> f32, shape (1, padded_out), zero-padded
    Padded rows/cols are zero, so padded lanes stay exactly zero layer-to-layer.
    """
    if feature_multiple is None:
        feature_multiple = _feature_multiple()
    padded = []
    for w, b in params:
        n, k = w.shape
        n_p = _pad_feature(n, feature_multiple)
        k_p = _pad_feature(k, feature_multiple)
        wp = jnp.zeros((n_p, k_p), compute_dtype).at[:n, :k].set(
            w.astype(compute_dtype))
        bp = jnp.zeros((1, k_p), jnp.float32).at[0, :k].set(
            b.astype(jnp.float32))
        padded.append((wp, bp))
    return padded


# ----------------------------------------------------------------------------
# One fused pallas_call for a chunk of layers.
# ----------------------------------------------------------------------------
def _run_chunk(h, chunk_params, *, relu_last, sigmoid_output, out_dtype,
               tm, grid_m):
    Mp, Kp = h.shape
    num_layers = len(chunk_params)
    Np = chunk_params[-1][0].shape[1]

    flat = []
    for w, b in chunk_params:
        flat.extend((w, b))

    kernel = functools.partial(_mlp_fused_kernel, num_layers=num_layers,
                               relu_last=relu_last,
                               sigmoid_output=sigmoid_output)

    # Advisory cost estimate for XLA's scheduler.
    flops = sum(2 * Mp * w.shape[0] * w.shape[1] for w, _ in chunk_params)
    wb_bytes = sum(w.size * w.dtype.itemsize + b.size * b.dtype.itemsize
                   for w, b in chunk_params)
    bytes_accessed = (h.size * h.dtype.itemsize
                      + Mp * Np * jnp.dtype(out_dtype).itemsize + wb_bytes)
    cost = pl.CostEstimate(flops=int(flops),
                           transcendentals=int(Mp * Np) if sigmoid_output else 0,
                           bytes_accessed=int(bytes_accessed))

    # Explicit VMEM budget: actual padded sizes + headroom (defaults are only
    # 16 MiB on v5e / 32 MiB on v6e-v7x and would reject larger fused chunks).
    widest = max([Kp] + [w.shape[1] for w, _ in chunk_params])
    act_bytes = 2 * tm * widest * 4                       # f32 intermediates
    io_bytes = (tm * Kp * h.dtype.itemsize
                + tm * Np * jnp.dtype(out_dtype).itemsize)
    if grid_m > 1:
        io_bytes *= 2                                     # x/out double-buffered
    need = wb_bytes + io_bytes + act_bytes
    vmem_limit = int(min(max(1.5 * need, 32 << 20), 64 << 20))

    out_shape = jax.ShapeDtypeStruct((Mp, Np), out_dtype)

    if grid_m == 1:
        # No grid: whole operands resident in VMEM, zero grid-step overhead.
        vmem = pl.BlockSpec(memory_space=pltpu.MemorySpace.VMEM)
        return pl.pallas_call(
            kernel,
            out_shape=out_shape,
            in_specs=[vmem] * (1 + len(flat)),
            out_specs=vmem,
            compiler_params=pltpu.CompilerParams(vmem_limit_bytes=vmem_limit),
            cost_estimate=cost,
        )(h, *flat)

    # Batch-tiled grid, "parallel" (v7x shards grid points across both TCs).
    in_specs = [pl.BlockSpec((tm, Kp), lambda i: (i, 0))]
    for w, b in chunk_params:
        # Grid-invariant operands: single-buffer them.  There is no DMA to
        # hide (same block every step), so double-buffering would only double
        # their VMEM footprint.
        in_specs.append(pl.BlockSpec(w.shape, lambda i: (0, 0),
                                     pipeline_mode=pl.Buffered(buffer_count=1)))
        in_specs.append(pl.BlockSpec(b.shape, lambda i: (0, 0),
                                     pipeline_mode=pl.Buffered(buffer_count=1)))
    return pl.pallas_call(
        kernel,
        out_shape=out_shape,
        grid=(grid_m,),
        in_specs=in_specs,
        out_specs=pl.BlockSpec((tm, Np), lambda i: (i, 0)),
        compiler_params=pltpu.CompilerParams(
            dimension_semantics=("parallel",),
            vmem_limit_bytes=vmem_limit),
        cost_estimate=cost,
    )(h, *flat)


# ----------------------------------------------------------------------------
# Wrapper: forward pass equivalent to MLP.forward.
# ----------------------------------------------------------------------------
def mlp_forward_pallas(x, padded_params, output_dim, *, sigmoid_output=False,
                       batch_tile=512, no_grid_batch=64, out_dtype=None,
                       weight_budget_bytes=None):
    M, K = x.shape
    compute_dtype = padded_params[0][0].dtype
    itemsize = jnp.dtype(compute_dtype).itemsize
    sub = 16 if itemsize == 2 else 8          # bf16 packs 2 rows / sublane
    if out_dtype is None:
        out_dtype = compute_dtype             # halves the output HBM write
    Kp0 = padded_params[0][0].shape[0]
    assert K <= Kp0

    # ---- batch tiling --------------------------------------------------
    tc = _num_tensorcores()
    if M <= no_grid_batch or (tc == 1 and M <= batch_tile):
        tm = _round_up(M, sub)
        Mp, grid_m = tm, 1
    else:
        grid_m = max(_cdiv(M, batch_tile), tc)
        grid_m = _round_up(grid_m, tc)        # even split across v7x's 2 TCs
        tm = _round_up(_cdiv(M, grid_m), sub)
        Mp = grid_m * tm

    h = jnp.zeros((Mp, Kp0), compute_dtype).at[:M, :K].set(
        x.astype(compute_dtype))

    # ---- group layers into VMEM-sized chunks ---------------------------
    # Inside a chunk the activation never leaves VMEM; between chunks it
    # round-trips HBM once (in the compute dtype), so the fused design still
    # compiles when the sum of weights exceeds VMEM (v7x: 64 MiB).
    if weight_budget_bytes is None:
        weight_budget_bytes = 24 << 20
    chunks, cur, cur_bytes = [], [], 0
    for w, b in padded_params:
        wb_bytes = w.size * w.dtype.itemsize + b.size * b.dtype.itemsize
        if cur and cur_bytes + wb_bytes > weight_budget_bytes:
            chunks.append(cur)
            cur, cur_bytes = [], 0
        cur.append((w, b))
        cur_bytes += wb_bytes
    chunks.append(cur)
    # TODO(synk): a single layer whose padded weight alone exceeds the VMEM
    # budget would additionally need K/N tiling (pltpu.emit_pipeline); not
    # required at these shapes.

    # ---- run chunks -----------------------------------------------------
    for ci, chunk in enumerate(chunks):
        is_final = ci == len(chunks) - 1
        h = _run_chunk(
            h, chunk,
            relu_last=not is_final,              # chunk-internal "last" layer
            sigmoid_output=sigmoid_output and is_final,
            out_dtype=out_dtype if is_final else compute_dtype,
            tm=tm, grid_m=grid_m)

    # Strip batch / lane padding (padded output lanes hold sigmoid(0)=0.5 etc.
    # and must never be read).
    return h[:M, :output_dim]


# ----------------------------------------------------------------------------
# Pure-JAX reference mirroring the kernel's numerics (same dtype choices).
# ----------------------------------------------------------------------------
def mlp_forward_ref(x, params, sigmoid_output=False,
                    compute_dtype=jnp.bfloat16):
    num_layers = len(params)
    h = x
    for i, (w, b) in enumerate(params):
        y = jnp.dot(h.astype(compute_dtype), w.astype(compute_dtype),
                    preferred_element_type=jnp.float32) + b.astype(jnp.float32)
        h = jnp.maximum(y, 0.0) if i < num_layers - 1 else y
    if sigmoid_output:
        h = jax.nn.sigmoid(h)
    return h


if __name__ == "__main__":
    # Small shapes consistent with the module's forward.
    batch = 8
    input_dim = 32
    hidden_dim = 64
    output_dim = 16
    num_layers = 3
    sigmoid_output = True

    key = jax.random.PRNGKey(0)
    key, xkey = jax.random.split(key)
    x = jax.random.normal(xkey, (batch, input_dim), jnp.float32)
    params = init_mlp_params(key, input_dim, hidden_dim, output_dim,
                             num_layers)

    # --- bf16 weights/activations, f32 accumulation (default fast path) ----
    padded_bf16 = prepare_params(params, jnp.bfloat16)
    out = mlp_forward_pallas(x, padded_bf16, output_dim,
                             sigmoid_output=sigmoid_output)
    out = jax.block_until_ready(out)
    ref = mlp_forward_ref(x, params, sigmoid_output=sigmoid_output,
                          compute_dtype=jnp.bfloat16)
    assert out.shape == (batch, output_dim), out.shape
    assert jnp.allclose(out.astype(jnp.float32), ref, atol=1e-2, rtol=1e-2), \
        "bf16 mismatch"

    # --- f32 everywhere, tight tolerance -----------------------------------
    padded_f32 = prepare_params(params, jnp.float32)
    out32 = mlp_forward_pallas(x, padded_f32, output_dim,
                               sigmoid_output=sigmoid_output)
    out32 = jax.block_until_ready(out32)
    ref32 = mlp_forward_ref(x, params, sigmoid_output=sigmoid_output,
                            compute_dtype=jnp.float32)
    assert jnp.allclose(out32, ref32, atol=1e-5, rtol=1e-5), "f32 mismatch"

    # --- larger batch exercising the batch-tiled 'parallel' grid path ------
    key, xkey2 = jax.random.split(key)
    xb = jax.random.normal(xkey2, (384, input_dim), jnp.float32)
    outb = mlp_forward_pallas(xb, padded_bf16, output_dim,
                              sigmoid_output=sigmoid_output, batch_tile=128)
    outb = jax.block_until_ready(outb)
    refb = mlp_forward_ref(xb, params, sigmoid_output=sigmoid_output,
                           compute_dtype=jnp.bfloat16)
    assert outb.shape == (384, output_dim), outb.shape
    assert jnp.allclose(outb.astype(jnp.float32), refb,
                        atol=1e-2, rtol=1e-2), "grid-path mismatch"

    # --- force the multi-chunk (VMEM-budgeted) fallback, layer-per-chunk ---
    outc = mlp_forward_pallas(x, padded_f32, output_dim,
                              sigmoid_output=sigmoid_output,
                              weight_budget_bytes=1)
    outc = jax.block_until_ready(outc)
    assert jnp.allclose(outc, ref32, atol=1e-5, rtol=1e-5), "chunked mismatch"

    print("KERNEL_OK")
</pallas_src>

<mosaic_0001>
module attributes {stable_mosaic.version = 11 : i64} {
  func.func @_mlp_fused_kernel(%arg0: memref<16x128xbf16, #tpu.memory_space<vmem>>, %arg1: memref<128x128xbf16, #tpu.memory_space<vmem>>, %arg2: memref<1x128xf32, #tpu.memory_space<vmem>>, %arg3: memref<128x128xbf16, #tpu.memory_space<vmem>>, %arg4: memref<1x128xf32, #tpu.memory_space<vmem>>, %arg5: memref<128x128xbf16, #tpu.memory_space<vmem>>, %arg6: memref<1x128xf32, #tpu.memory_space<vmem>>, %arg7: memref<16x128xbf16, #tpu.memory_space<vmem>>) attributes {dimension_semantics = [], scalar_prefetch = 0 : i64, scratch_operands = 0 : i64, tpu.core_type = #tpu.core_type<tc>} {
    %c0 = arith.constant 0 : index
    %c0_0 = arith.constant 0 : index
    %0 = vector.load %arg0[%c0, %c0_0] : memref<16x128xbf16, #tpu.memory_space<vmem>>, vector<16x128xbf16>
    %c0_1 = arith.constant 0 : index
    %c0_2 = arith.constant 0 : index
    %1 = vector.load %arg1[%c0_1, %c0_2] : memref<128x128xbf16, #tpu.memory_space<vmem>>, vector<128x128xbf16>
    %c0_3 = arith.constant 0 : index
    %c0_4 = arith.constant 0 : index
    %2 = vector.load %arg2[%c0_3, %c0_4] : memref<1x128xf32, #tpu.memory_space<vmem>>, vector<1x128xf32>
    %cst = arith.constant dense<0.000000e+00> : vector<16x128xf32>
    %3 = tpu.matmul %0, %1, %cst {dimension_numbers = #tpu.dot_dimension_numbers<[1], [0], [0], [1], [0, 0, 1, 1], [], []>} : vector<16x128xbf16>, vector<128x128xbf16>, vector<16x128xf32> -> vector<16x128xf32>
    %4 = vector.broadcast %2 : vector<1x128xf32> to vector<16x128xf32>
    %5 = arith.addf %3, %4 : vector<16x128xf32>
    %cst_5 = arith.constant 0.000000e+00 : f32
    %6 = vector.broadcast %cst_5 : f32 to vector<16x128xf32>
    %7 = arith.maximumf %5, %6 : vector<16x128xf32>
    %8 = arith.truncf %7 : vector<16x128xf32> to vector<16x128xbf16>
    %c0_6 = arith.constant 0 : index
    %c0_7 = arith.constant 0 : index
    %9 = vector.load %arg3[%c0_6, %c0_7] : memref<128x128xbf16, #tpu.memory_space<vmem>>, vector<128x128xbf16>
    %c0_8 = arith.constant 0 : index
    %c0_9 = arith.constant 0 : index
    %10 = vector.load %arg4[%c0_8, %c0_9] : memref<1x128xf32, #tpu.memory_space<vmem>>, vector<1x128xf32>
    %cst_10 = arith.constant dense<0.000000e+00> : vector<16x128xf32>
    %11 = tpu.matmul %8, %9, %cst_10 {dimension_numbers = #tpu.dot_dimension_numbers<[1], [0], [0], [1], [0, 0, 1, 1], [], []>} : vector<16x128xbf16>, vector<128x128xbf16>, vector<16x128xf32> -> vector<16x128xf32>
    %12 = vector.broadcast %10 : vector<1x128xf32> to vector<16x128xf32>
    %13 = arith.addf %11, %12 : vector<16x128xf32>
    %cst_11 = arith.constant 0.000000e+00 : f32
    %14 = vector.broadcast %cst_11 : f32 to vector<16x128xf32>
    %15 = arith.maximumf %13, %14 : vector<16x128xf32>
    %16 = arith.truncf %15 : vector<16x128xf32> to vector<16x128xbf16>
    %c0_12 = arith.constant 0 : index
    %c0_13 = arith.constant 0 : index
    %17 = vector.load %arg5[%c0_12, %c0_13] : memref<128x128xbf16, #tpu.memory_space<vmem>>, vector<128x128xbf16>
    %c0_14 = arith.constant 0 : index
    %c0_15 = arith.constant 0 : index
    %18 = vector.load %arg6[%c0_14, %c0_15] : memref<1x128xf32, #tpu.memory_space<vmem>>, vector<1x128xf32>
    %cst_16 = arith.constant dense<0.000000e+00> : vector<16x128xf32>
    %19 = tpu.matmul %16, %17, %cst_16 {dimension_numbers = #tpu.dot_dimension_numbers<[1], [0], [0], [1], [0, 0, 1, 1], [], []>} : vector<16x128xbf16>, vector<128x128xbf16>, vector<16x128xf32> -> vector<16x128xf32>
    %20 = vector.broadcast %18 : vector<1x128xf32> to vector<16x128xf32>
    %21 = arith.addf %19, %20 : vector<16x128xf32>
    %22 = arith.negf %21 : vector<16x128xf32>
    %23 = math.exp %22 : vector<16x128xf32>
    %cst_17 = arith.constant 1.000000e+00 : f32
    %24 = vector.broadcast %cst_17 : f32 to vector<16x128xf32>
    %25 = arith.addf %24, %23 : vector<16x128xf32>
    %26 = arith.divf %24, %25 : vector<16x128xf32>
    %27 = arith.truncf %26 : vector<16x128xf32> to vector<16x128xbf16>
    %c0_18 = arith.constant 0 : index
    %c0_19 = arith.constant 0 : index
    %28 = vector.load %arg7[%c0_18, %c0_19] : memref<16x128xbf16, #tpu.memory_space<vmem>>, vector<16x128xbf16>
    tpu.vector_store %arg7[%c0_18, %c0_19], %27 {strides = array<i32>} : memref<16x128xbf16, #tpu.memory_space<vmem>>, vector<16x128xbf16>,
    return
  }
}

</mosaic_0001>

<bundles_post_ra>
// kernel: tpu_custom_call.1
= control target key start
LH: loop header
LB: loop body
LE: loop exit
PB: predicated region body
PF: predicated region fallthrough
CT: control target
= control target key end

     0   :  { %12 = vsyncpa [#allocation3], 0  ;;  %s937_s0 = inlined_call_operand.hbm [shape: bf16[16,128], index: 0, kind: input, shape index: {}]   ;;  %s938_s1 = inlined_call_operand.hbm [shape: bf16[128,128], index: 1, kind: input, shape index: {}]   ;;  %s939_s2 = inlined_call_operand.vmem [shape: f32[1,128], index: 2, kind: input, shape index: {}]   ;;  %s940_s3 = inlined_call_operand.hbm [shape: bf16[128,128], index: 3, kind: input, shape index: {}]   ;;  %s941_s4 = inlined_call_operand.vmem [shape: f32[1,128], index: 4, kind: input, shape index: {}]   ;;  %s942_s5 = inlined_call_operand.hbm [shape: bf16[128,128], index: 5, kind: input, shape index: {}]   ;;  %s943_s6 = inlined_call_operand.vmem [shape: f32[1,128], index: 6, kind: input, shape index: {}]   ;;  %s944_s7 = inlined_call_operand.hbm [shape: bf16[16,128], index: 7, kind: output, shape index: {}]  }
   0x1   :  { %13 = vsyncpa [#allocation6], 0 }
   0x2   :  { %14 = vsyncpa [#allocation9], 0 }
   0x3   :  { %15 = vsyncpa [#allocation4], 0  ;;  %s760_s24 = smov [#allocation5]   ;;  %s761_s26 = smov [#allocation2]  }
   0x4   :  { %s33_s25 = sshll.u32 %s760_s24, 4  ;;  %s21_s27 = sshll.u32 %s761_s26, 4  ;;  %s34_s25 = int_to_ptr.vmem [resolvable:$true] %s33_s25  ;;  %s809_s27 = int_to_ptr.vmem [resolvable:$true] %s21_s27 }
   0x5   :  { %s642_s30 = scalar_lea.hbm %s938_s1, 1024 }
   0x6   :  { %p643_p0 = scmp.ne.s32.totalorder %s938_s1, %s642_s30  ;;  %p646_p1 = scmp.lt.u32.totalorder %s642_s30, %s938_s1 }
   0x8   :  { %p648_p2 = pnand %p646_p1, %p643_p0 }
   0xa   :  { %651 = shalt.err (!%p648_p2)
}
   0xb   :  { %s652_s12 = scalar_lea.vmem %s34_s25, 1024  ;;  %p657_p4 = scmp.lt.s32.totalorder %s34_s25, %s34_s25 }
   0xc   :  { %p653_p3 = scmp.ne.s32.totalorder %s34_s25, %s652_s12  ;;  %p658_p5 = scmp.lt.s32.totalorder %s652_s12, %s652_s12 }
   0xe   :  { %p659_p6 = por %p658_p5, %p657_p4 }
  0x10   :  { %p660_p7 = pnand %p659_p6, %p653_p3 }
  0x12   :  { %663 = shalt.err (!%p660_p7)
}
  0x13   :  { %s762_s13 = smov 64   ;;  %s763_s14 = smov 4  }
  0x14   :  { %39 = dma.hbm_to_vmem [thread:$0]  %s938_s1, 1024, %s34_s25, [#allocation6], %s762_s13, %s762_s13, %s763_s14  }
  0x15   :  { %s664_s19 = scalar_lea.hbm %s937_s0, 128 }
  0x16   :  { %p665_p8 = scmp.ne.s32.totalorder %s937_s0, %s664_s19  ;;  %p668_p9 = scmp.lt.u32.totalorder %s664_s19, %s937_s0 }
  0x18   :  { %p670_p10 = pnand %p668_p9, %p665_p8 }
  0x1a   :  { %673 = shalt.err (!%p670_p10)
}
  0x1b   :  { %s674_s24 = scalar_lea.vmem %s809_s27, 128  ;;  %p679_p12 = scmp.lt.s32.totalorder %s809_s27, %s809_s27 }
  0x1c   :  { %p675_p11 = scmp.ne.s32.totalorder %s809_s27, %s674_s24  ;;  %p680_p13 = scmp.lt.s32.totalorder %s674_s24, %s674_s24 }
  0x1e   :  { %p681_p0 = por %p680_p13, %p679_p12 }
  0x20   :  { %p682_p1 = pnand %p681_p0, %p675_p11 }
  0x22   :  { %685 = shalt.err (!%p682_p1)
}
  0x23   :  { %27 = dma.hbm_to_vmem [thread:$0]  %s937_s0, 128, %s809_s27, [#allocation3], %s762_s13, %s762_s13, %s763_s14  }
  0x24   :  { %s764_s26 = smov [#allocation7]   ;;  %s765_s29 = smov [#allocation8]  }
  0x25   :  { %s47_s28 = sshll.u32 %s764_s26, 4  ;;  %s61_s30 = sshll.u32 %s765_s29, 4  ;;  %s48_s28 = int_to_ptr.vmem [resolvable:$true] %s47_s28  ;;  %s846_s30 = int_to_ptr.vmem [resolvable:$true] %s61_s30 }
  0x26   :  { %s686_s10 = scalar_lea.hbm %s940_s3, 1024 }
  0x27   :  { %p687_p2 = scmp.ne.s32.totalorder %s940_s3, %s686_s10  ;;  %p690_p3 = scmp.lt.u32.totalorder %s686_s10, %s940_s3 }
  0x29   :  { %p692_p4 = pnand %p690_p3, %p687_p2 }
  0x2b   :  { %695 = shalt.err (!%p692_p4)
}
  0x2c   :  { %s696_s0 = scalar_lea.vmem %s48_s28, 1024  ;;  %p701_p6 = scmp.lt.s32.totalorder %s48_s28, %s48_s28 }
  0x2d   :  { %p697_p5 = scmp.ne.s32.totalorder %s48_s28, %s696_s0  ;;  %p702_p7 = scmp.lt.s32.totalorder %s696_s0, %s696_s0 }
  0x2f   :  { %p703_p8 = por %p702_p7, %p701_p6 }
  0x31   :  { %p704_p9 = pnand %p703_p8, %p697_p5 }
  0x33   :  { %707 = shalt.err (!%p704_p9)
}
  0x34   :  { %53 = dma.hbm_to_vmem [thread:$0]  %s940_s3, 1024, %s48_s28, [#allocation6], %s762_s13, %s762_s13, %s763_s14  }
  0x35   :  { %s708_s20 = scalar_lea.hbm %s942_s5, 1024 }
  0x36   :  { %p709_p10 = scmp.ne.s32.totalorder %s942_s5, %s708_s20  ;;  %p712_p11 = scmp.lt.u32.totalorder %s708_s20, %s942_s5 }
  0x38   :  { %p714_p12 = pnand %p712_p11, %p709_p10 }
  0x3a   :  { %717 = shalt.err (!%p714_p12)
}
  0x3b   :  { %s718_s1 = scalar_lea.vmem %s846_s30, 1024  ;;  %p723_p0 = scmp.lt.s32.totalorder %s846_s30, %s846_s30 }
  0x3c   :  { %p719_p13 = scmp.ne.s32.totalorder %s846_s30, %s718_s1  ;;  %p724_p1 = scmp.lt.s32.totalorder %s718_s1, %s718_s1 }
  0x3e   :  { %p725_p2 = por %p724_p1, %p723_p0 }
  0x40   :  { %p726_p3 = pnand %p725_p2, %p719_p13 }
  0x42   :  { %729 = shalt.err (!%p726_p3)
}
  0x43   :  { %67 = dma.hbm_to_vmem [thread:$0]  %s942_s5, 1024, %s846_s30, [#allocation9], %s762_s13, %s762_s13, %s763_s14  }
  0x44   :  { %752 = dma.done.wait [#allocation3], 128  }
  0x45   :  { %753 = vsyncadd [#allocation3], 4294967168 }
  0x46   :  { %754 = dma.done.wait [#allocation6], 2048  }
  0x47   :  { %755 = vsyncadd [#allocation6], 4294965248 }
  0x48   :  { %756 = dma.done.wait [#allocation9], 1024  }
  0x49   :  { %757 = vsyncadd [#allocation9], 4294966272  ;;  %v766_v0 = vmov 0.0   ;;  %vm767_vm0 = vmmov 0   ;;  %v609_v1 = vld [vmem:[#allocation5] sm:$0xff]   ;;  %v610_v2 = vld [vmem:[#allocation5 + $0x8] sm:$0xff]  }
  0x4a   :  { %540 = vmatprep.subr.bf16.mxu0 %v766_v0  ;;  %556 = vmatprep.mubr.msk.bf16.mxu0 %vm767_vm0, %v766_v0  ;;  %v611_v3 = vld [vmem:[#allocation5 + $0x10] sm:$0xff]   ;;  %v618_v4 = vld [vmem:[#allocation7] sm:$0xff]   ;;  %v612_v5 = vld [vmem:[#allocation5 + $0x18] sm:$0xff]  }
  0x4b   :  { %560 = vmatprep.subr.bf16.mxu1 %v766_v0  ;;  %576 = vmatprep.mubr.msk.bf16.mxu1 %vm767_vm0, %v766_v0  ;;  %v619_v6 = vld [vmem:[#allocation7 + $0x8] sm:$0xff]   ;;  %v613_v7 = vld [vmem:[#allocation5 + $0x20] sm:$0xff]   ;;  %v620_v8 = vld [vmem:[#allocation7 + $0x10] sm:$0xff]  }
  0x4c   :  { %541 = vmatpush3.bf16.msra.mxu0 %v609_v1  ;;  %561 = vmatpush3.bf16.msra.mxu1 %v618_v4  ;;  %v614_v9 = vld [vmem:[#allocation5 + $0x28] sm:$0xff]   ;;  %v621_v10 = vld [vmem:[#allocation7 + $0x18] sm:$0xff]   ;;  %v615_v11 = vld [vmem:[#allocation5 + $0x30] sm:$0xff]  }
  0x4d   :  { %542 = vmatprep.subr.bf16.mxu0 %v766_v0  ;;  %562 = vmatprep.subr.bf16.mxu1 %v766_v0  ;;  %v622_v12 = vld [vmem:[#allocation7 + $0x20] sm:$0xff]   ;;  %v616_v13 = vld [vmem:[#allocation5 + $0x38] sm:$0xff]   ;;  %v623_v14 = vld [vmem:[#allocation7 + $0x28] sm:$0xff]  }
  0x4e   :  { %v617_v15 = vld [vmem:[#allocation2] sm:$0xff]   ;;  %v624_v16 = vld [vmem:[#allocation7 + $0x30] sm:$0xff]   ;;  %v626_v18 = vld [vmem:[#allocation8] sm:$0xff]  }
  0x4f   :  { %v625_v17 = vld [vmem:[#allocation7 + $0x38] sm:$0xff]   ;;  %v627_v19 = vld [vmem:[#allocation8 + $0x8] sm:$0xff]   ;;  %v628_v20 = vld [vmem:[#allocation8 + $0x10] sm:$0xff]  }
  0x50   :  { %543 = vmatpush3.bf16.msra.mxu0 %v610_v2  ;;  %563 = vmatpush3.bf16.msra.mxu1 %v619_v6  ;;  %v629_v21 = vld [vmem:[#allocation8 + $0x18] sm:$0xff]   ;;  %v630_v22 = vld [vmem:[#allocation8 + $0x20] sm:$0xff]   ;;  %v631_v23 = vld [vmem:[#allocation8 + $0x28] sm:$0xff]  }
  0x51   :  { %544 = vmatprep.subr.bf16.mxu0 %v766_v0  ;;  %564 = vmatprep.subr.bf16.mxu1 %v766_v0  ;;  %v474_v24 = vld [vmem:[%s939_s2] ss:$0 sm:$0xff]  ;;  %v632_v34 = vld [vmem:[#allocation8 + $0x30] sm:$0xff]  }
  0x52   :  { %v633_v35 = vld [vmem:[#allocation8 + $0x38] sm:$0xff]  }
  0x53   :  { %v484_v36 = vld [vmem:[%s941_s4] ss:$0 sm:$0xff]  ;;  %s768_s4 = smov [#allocation10]  }
  0x54   :  { %545 = vmatpush3.bf16.msra.mxu0 %v611_v3  ;;  %565 = vmatpush3.bf16.msra.mxu1 %v620_v8  ;;  %v493_v46 = vld [vmem:[%s943_s6] ss:$0 sm:$0xff]  ;;  %s460_s8 = sshll.u32 %s768_s4, 4  ;;  %s461_s8 = int_to_ptr.vmem [resolvable:$true] %s460_s8 }
  0x55   :  { %546 = vmatprep.subr.bf16.mxu0 %v766_v0  ;;  %566 = vmatprep.subr.bf16.mxu1 %v766_v0  ;;  %s730_s6 = scalar_lea.vmem %s461_s8, 128  ;;  %p735_p5 = scmp.lt.s32.totalorder %s461_s8, %s461_s8 }
  0x56   :  { %p731_p4 = scmp.ne.s32.totalorder %s461_s8, %s730_s6  ;;  %p736_p6 = scmp.lt.s32.totalorder %s730_s6, %s730_s6 }
  0x58   :  { %547 = vmatpush3.bf16.msra.mxu0 %v612_v5  ;;  %567 = vmatpush3.bf16.msra.mxu1 %v621_v10  ;;  %p737_p7 = por %p736_p6, %p735_p5 }
  0x59   :  { %548 = vmatprep.subr.bf16.mxu0 %v766_v0  ;;  %568 = vmatprep.subr.bf16.mxu1 %v766_v0 }
  0x5a   :  { %p738_p8 = pnand %p737_p7, %p731_p4 }
  0x5c   :  { %549 = vmatpush3.bf16.msra.mxu0 %v613_v7  ;;  %569 = vmatpush3.bf16.msra.mxu1 %v622_v12 }
  0x5d   :  { %550 = vmatprep.subr.bf16.mxu0 %v766_v0  ;;  %570 = vmatprep.subr.bf16.mxu1 %v766_v0 }
  0x60   :  { %551 = vmatpush3.bf16.msra.mxu0 %v614_v9  ;;  %571 = vmatpush3.bf16.msra.mxu1 %v623_v14 }
  0x61   :  { %552 = vmatprep.subr.bf16.mxu0 %v766_v0  ;;  %572 = vmatprep.subr.bf16.mxu1 %v766_v0 }
  0x64   :  { %553 = vmatpush3.bf16.msra.mxu0 %v615_v11  ;;  %573 = vmatpush3.bf16.msra.mxu1 %v624_v16 }
  0x65   :  { %554 = vmatprep.subr.bf16.mxu0 %v766_v0  ;;  %574 = vmatprep.subr.bf16.mxu1 %v766_v0 }
  0x68   :  { %555 = vmatpush3.bf16.msra.mxu0 %v616_v13  ;;  %575 = vmatpush3.bf16.msra.mxu1 %v625_v17 }
  0x69   :  { %580 = vmatprep.subr.bf16.mxu0 %v766_v0 }
  0x6b   :  { %557 = vmatmul.mubr.bf16.vlgmr.msra.gmra.mrb[0].mxu0 %v617_v15 }
  0x6c   :  { %596 = vmatprep.mubr.msk.bf16.mxu0 %vm767_vm0, %v766_v0  ;;  %581 = vmatpush3.bf16.msra.mxu0 %v626_v18 }
  0x6d   :  { %582 = vmatprep.subr.bf16.mxu0 %v766_v0 }
  0x70   :  { %583 = vmatpush3.bf16.msra.mxu0 %v627_v19 }
  0x71   :  { %584 = vmatprep.subr.bf16.mxu0 %v766_v0 }
  0x74   :  { %585 = vmatpush3.bf16.msra.mxu0 %v628_v20 }
  0x75   :  { %586 = vmatprep.subr.bf16.mxu0 %v766_v0 }
  0x78   :  { %587 = vmatpush3.bf16.msra.mxu0 %v629_v21 }
  0x79   :  { %588 = vmatprep.subr.bf16.mxu0 %v766_v0 }
  0x7c   :  { %589 = vmatpush3.bf16.msra.mxu0 %v630_v22 }
  0x7d   :  { %590 = vmatprep.subr.bf16.mxu0 %v766_v0 }
  0x80   :  { %591 = vmatpush3.bf16.msra.mxu0 %v631_v23 }
  0x81   :  { %592 = vmatprep.subr.bf16.mxu0 %v766_v0 }
  0x84   :  { %593 = vmatpush3.bf16.msra.mxu0 %v632_v34 }
  0x85   :  { %594 = vmatprep.subr.bf16.mxu0 %v766_v0 }
  0x88   :  { %595 = vmatpush3.bf16.msra.mxu0 %v633_v35 }
 0x13e   :  { %v196_v25 = vpop.f32.mrb[0].mxu0 }
 0x13f   :  { %v197_v26 = vadd.f32 %v474_v24, %v196_v25  ;;  %v558_v27 = vpop.f32.mrb[1].mxu0 }
 0x140   :  { %v199_v28 = vpop.f32.mrb[2].mxu0 }
 0x141   :  { %v200_v29 = vadd.f32 %v474_v24, %v199_v28  ;;  %v559_v30 = vpop.f32.mrb[3].mxu0  ;;  %v203_v31 = vmax.f32 %v197_v26, 0.0 }
 0x143   :  { %v204_v32 = vmax.f32 %v200_v29, 0.0 }
 0x145   :  { %v205_v33 = vpack.c.bf16 %v204_v32, %v203_v31 }
 0x147   :  { %577 = vmatmul.mubr.bf16.vlgmr.msra.gmra.mrb[0].mxu1 %v205_v33 }
 0x21a   :  { %v311_v37 = vpop.f32.mrb[0].mxu1 }
 0x21b   :  { %v312_v38 = vadd.f32 %v484_v36, %v311_v37  ;;  %v578_v39 = vpop.f32.mrb[1].mxu1 }
 0x21c   :  { %v314_v40 = vpop.f32.mrb[2].mxu1 }
 0x21d   :  { %v315_v41 = vadd.f32 %v484_v36, %v314_v40  ;;  %v579_v42 = vpop.f32.mrb[3].mxu1  ;;  %v318_v43 = vmax.f32 %v312_v38, 0.0 }
 0x21f   :  { %v319_v44 = vmax.f32 %v315_v41, 0.0 }
 0x221   :  { %v320_v45 = vpack.c.bf16 %v319_v44, %v318_v43 }
 0x223   :  { %597 = vmatmul.mubr.bf16.vlgmr.msra.gmra.mrb[4].mxu0 %v320_v45 }
 0x2f6   :  { %v426_v47 = vpop.f32.mrb[4].mxu0 }
 0x2f7   :  { %v427_v48 = vadd.f32 %v493_v46, %v426_v47  ;;  %v598_v49 = vpop.f32.mrb[5].mxu0 }
 0x2f8   :  { %v429_v50 = vpop.f32.mrb[6].mxu0 }
 0x2f9   :  { %v502_v51 = vmul.f32 -1.442695, %v427_v48  ;;  %v430_v52 = vadd.f32 %v493_v46, %v429_v50  ;;  %v599_v53 = vpop.f32.mrb[7].mxu0 }
 0x2fb   :  { %634 = vpow2.f32 %v502_v51  ;;  %v503_v54 = vmul.f32 -1.442695, %v430_v52 }
 0x2fd   :  { %636 = vpow2.f32 %v503_v54 }
 0x305   :  { %v635_v55 = vpop.eup %634 }
 0x306   :  { %v439_v56 = vadd.f32 1.0, %v635_v55 }
 0x307   :  { %v637_v57 = vpop.eup %636 }
 0x308   :  { %v440_v58 = vadd.f32 1.0, %v637_v57  ;;  %638 = vrcp.f32 %v439_v56 }
 0x30a   :  { %640 = vrcp.f32 %v440_v58 }
 0x312   :  { %v639_v59 = vpop.eup %638 }
 0x314   :  { %v641_v60 = vpop.eup %640 }
 0x315   :  { %v511_v61 = vpack.c.bf16 %v641_v60, %v639_v59 }
 0x317   :  { %512 = vst [vmem:[#allocation10] sm:$0xff] %v511_v61  }
 0x318   :  { %741 = shalt.err (!%p738_p8)
}
 0x319   :  { %s742_s11 = scalar_lea.hbm %s944_s7, 128 }
 0x31a   :  { %p743_p9 = scmp.ne.s32.totalorder %s944_s7, %s742_s11  ;;  %p746_p10 = scmp.lt.u32.totalorder %s742_s11, %s944_s7 }
 0x31c   :  { %p748_p11 = pnand %p746_p10, %p743_p9 }
 0x31e   :  { %751 = shalt.err (!%p748_p11)
}
 0x31f   :  { %466 = dma.vmem_to_hbm [thread:$0]  %s461_s8, 128, %s944_s7, [#allocation4], %s762_s13, %s762_s13, %s763_s14  }
 0x320   :  { %758 = dma.done.wait [#allocation4], 128  }
 0x321   :  { %759 = vsyncadd [#allocation4], 4294967168 }
 0x322   :  { %470 = vsyncpa [#allocation3], 1 }
 0x323   :  { %471 = vsyncpa [#allocation6], 1 }
 0x324   :  { %472 = vsyncpa [#allocation9], 1 }
 0x325   :  { %473 = vsyncpa [#allocation4], 1 }

</bundles_post_ra>
